<compile_context>
chip_gen: v6e
topology: v6e:2x2x1
jax: 0.10.0
libtpu: 0.0.40
codegen_flags: <defaults>
</compile_context>

<pallas_src>
import math

import jax
import jax.numpy as jnp
import numpy as np
from jax.experimental import pallas as pl
from jax.experimental.pallas import tpu as pltpu


def _copy_rows_kernel(x_ref, o_ref):
    """Dense tile copy: (1, R, D) -> (1, R, D)."""
    o_ref[...] = x_ref[...]


def _round_up(x, m):
    return (x + m - 1) // m * m


def time_reduction(x, lengths, stride, *, row_tile=None):
    """JAX/Pallas equivalent of _TimeReduction.forward.

    Args:
      x:        (B, T, D) float array.
      lengths:  (B,) int array.
      stride:   python int.
      row_tile: optional override for the number of *input* rows per tile.

    Returns:
      (output, out_lengths): ((B, T // stride, D * stride), (B,))
    """
    B, T, D = x.shape
    num_frames = T - T % stride
    t_max = num_frames // stride

    # lengths.div(stride, rounding_mode='trunc'); identical to // for
    # non-negative sequence lengths.
    out_lengths = lengths // stride

    if t_max == 0:
        # T < stride: empty time axis, nothing to copy.
        return jnp.zeros((B, 0, D * stride), dtype=x.dtype), out_lengths

    itemsize = jnp.dtype(x.dtype).itemsize
    # Sublane packing: 8 rows/vreg for 32-bit, 16 for bf16, 32 for int8/fp8.
    sublane_mult = 8 * max(1, 4 // itemsize)
    # Align tiles to whole output frames too (tidy; not required for correctness
    # since the copy is flat).
    align = sublane_mult * stride // math.gcd(sublane_mult, stride)

    if row_tile is None:
        # ~2 MiB per tile => double-buffered in + out ~ 8 MiB, comfortably under
        # the default scoped-VMEM limit on v5e / v6e / v7x.
        budget_bytes = 2 * 1024 * 1024
        row_tile = max(1, budget_bytes // (D * itemsize))
    R = max(align, (int(row_tile) // align) * align)
    R = min(R, _round_up(num_frames, align))
    n_r = pl.cdiv(num_frames, R)

    # Pure prefix memcpy of the first num_frames rows of each batch element.
    # Input block j overhanging past num_frames (or T) is padded by Pallas and
    # only feeds output rows that are never written back.
    out_flat = pl.pallas_call(
        _copy_rows_kernel,
        out_shape=jax.ShapeDtypeStruct((B, num_frames, D), x.dtype),
        grid=(B, n_r),
        in_specs=[pl.BlockSpec((1, R, D), lambda b, j: (b, j, 0))],
        out_specs=pl.BlockSpec((1, R, D), lambda b, j: (b, j, 0)),
        compiler_params=pltpu.CompilerParams(
            dimension_semantics=("parallel", "parallel"),
        ),
    )(x)

    # Free metadata reshape of the contiguous output: (B, num_frames, D)
    # -> (B, num_frames // stride, stride * D).
    out = out_flat.reshape(B, t_max, D * stride)
    return out, out_lengths


def _reference(x, lengths, stride):
    B, T, D = x.shape
    num_frames = T - T % stride
    t_max = num_frames // stride
    out = x[:, :num_frames, :].reshape(B, t_max, D * stride)
    return out, lengths // stride


def _check(out, out_len, ref_out, ref_len):
    np.testing.assert_allclose(
        np.asarray(out).astype(np.float32),
        np.asarray(ref_out).astype(np.float32),
        rtol=0, atol=0)
    np.testing.assert_array_equal(np.asarray(out_len), np.asarray(ref_len))


if __name__ == "__main__":
    key0, key1, key2 = jax.random.split(jax.random.PRNGKey(0), 3)

    # Test 1: f32, T not a multiple of stride (exercises the implicit trim).
    B, T, D, STRIDE = 2, 66, 128, 4
    x = jax.random.normal(key0, (B, T, D), dtype=jnp.float32)
    lengths = jnp.array([66, 30], dtype=jnp.int32)

    out, out_len = time_reduction(x, lengths, STRIDE)
    out = jax.block_until_ready(out)
    out_len = jax.block_until_ready(out_len)
    _check(out, out_len, *_reference(x, lengths, STRIDE))
    assert out.shape == (B, T // STRIDE, D * STRIDE)
    assert out_len.shape == (B,)

    # Test 2: bf16, small forced row tile -> several tiles plus a partial
    # trailing tile (masked output rows + padded input overhang).
    B2, T2, D2, STRIDE2 = 2, 100, 128, 4
    x2 = jax.random.normal(key1, (B2, T2, D2), dtype=jnp.bfloat16)
    lengths2 = jnp.array([100, 37], dtype=jnp.int32)

    out2, out_len2 = time_reduction(x2, lengths2, STRIDE2, row_tile=24)
    out2 = jax.block_until_ready(out2)
    out_len2 = jax.block_until_ready(out_len2)
    _check(out2, out_len2, *_reference(x2, lengths2, STRIDE2))
    assert out2.shape == (B2, T2 // STRIDE2, D2 * STRIDE2)

    # Test 3: odd stride and narrow feature dim (full-dim lane block).
    B3, T3, D3, STRIDE3 = 2, 20, 64, 3
    x3 = jax.random.normal(key2, (B3, T3, D3), dtype=jnp.float32)
    lengths3 = jnp.array([20, 11], dtype=jnp.int32)

    out3, out_len3 = time_reduction(x3, lengths3, STRIDE3)
    out3 = jax.block_until_ready(out3)
    out_len3 = jax.block_until_ready(out_len3)
    _check(out3, out_len3, *_reference(x3, lengths3, STRIDE3))
    assert out3.shape == (B3, T3 // STRIDE3, D3 * STRIDE3)

    print("KERNEL_OK")
</pallas_src>

<mosaic_0001>
module attributes {stable_mosaic.version = 11 : i64} {
  func.func @_copy_rows_kernel(%arg0: i32, %arg1: i32, %arg2: memref<1x64x128xf32, #tpu.memory_space<vmem>>, %arg3: memref<1x64x128xf32, #tpu.memory_space<vmem>>) attributes {dimension_semantics = [#tpu.dimension_semantics<parallel>, #tpu.dimension_semantics<parallel>], iteration_bounds = array<i64: 2, 1>, scalar_prefetch = 0 : i64, scratch_operands = 0 : i64, tpu.core_type = #tpu.core_type<tc>, window_params = [{transform_indices = @transform_0, window_bounds = array<i64: 1, 64, 128>}, {transform_indices = @transform_1, window_bounds = array<i64: 1, 64, 128>}]} {
    %c0 = arith.constant 0 : index
    %c0_0 = arith.constant 0 : index
    %c0_1 = arith.constant 0 : index
    %0 = vector.load %arg2[%c0, %c0_0, %c0_1] : memref<1x64x128xf32, #tpu.memory_space<vmem>>, vector<1x64x128xf32>
    %c0_2 = arith.constant 0 : index
    %c0_3 = arith.constant 0 : index
    %c0_4 = arith.constant 0 : index
    %1 = vector.load %arg3[%c0_2, %c0_3, %c0_4] : memref<1x64x128xf32, #tpu.memory_space<vmem>>, vector<1x64x128xf32>
    tpu.vector_store %arg3[%c0_2, %c0_3, %c0_4], %0 {strides = array<i32>} : memref<1x64x128xf32, #tpu.memory_space<vmem>>, vector<1x64x128xf32>,
    return
  }
  func.func @transform_0(%arg0: i32, %arg1: i32) -> (i32, i32, i32) {
    %c0_i32 = arith.constant 0 : i32
    %c0_i32_0 = arith.constant 0 : i32
    return %arg0, %arg1, %c0_i32 : i32, i32, i32
  }
  func.func @transform_1(%arg0: i32, %arg1: i32) -> (i32, i32, i32) {
    %c0_i32 = arith.constant 0 : i32
    %c0_i32_0 = arith.constant 0 : i32
    return %arg0, %arg1, %c0_i32 : i32, i32, i32
  }
}

</mosaic_0001>

<bundles_post_ra>
// kernel: tpu_custom_call.1
= control target key start
LH: loop header
LB: loop body
LE: loop exit
PB: predicated region body
PF: predicated region fallthrough
CT: control target
= control target key end

     0   :  { %6 = vsyncpa [#allocation3], 0  ;;  %s553_s0 = inlined_call_operand.vmem [shape: f32[2,66,128], index: 0, kind: input, shape index: {}]   ;;  %s554_s1 = inlined_call_operand.hbm [shape: f32[2,64,128], index: 1, kind: output, shape index: {}]  }
   0x1   :  { %8 = vsyncpa [#allocation3 + $0x1], 0  ;;  %s439_s6 = smov 0   ;;  %s441_s7 = smov 0  }
   0x2   :  { %s443_s8 = smov 0   ;;  %s445_s9 = smov 0  }
   0x3   :  { %s447_s10 = smov 0   ;;  %s449_s11 = smov 0  }
   0x4 LB: > { %s277_s12 = sadd.s32 4294967295, %s424_s11   ;;  %s278_s13 = sadd.s32 4294967294, %s424_s11   ;;  %s424_s11 = sphi %s449_s11, %s14_s11   ;;  %s420_s10 = sphi %s447_s10, %s561_s10   ;;  %s416_s9 = sphi %s445_s9, %s560_s9   ;;  %s412_s8 = sphi %s443_s8, %s559_s8   ;;  %s408_s7 = sphi %s441_s7, %s558_s7   ;;  %s404_s6 = sphi %s439_s6, %s557_s6  }
   0x5   : > { %s26_s14 = sadd.s32 1, %s420_s10  ;;  %s63_s15 = sadd.s32 1, %s412_s8 }
   0x6   : > { %p28_p0 = scmp.ge.s32.totalorder %s26_s14, 2  ;;  %p73_p1 = scmp.ne.s32.totalorder %s412_s8, %s408_s7 }
   0x7   : > { %p74_p2 = scmp.eq.s32.totalorder %s277_s12, 1  ;;  %p79_p3 = scmp.ne.s32.totalorder %s408_s7, %s404_s6 }
   0x8   : > { %s563_s14 = smov (%p28_p0, %s26_s14), 0  ;;  %p80_p5 = scmp.eq.s32.totalorder %s278_s13, 1 }
   0x9   : > { %p479_p4 = por %p74_p2, %p73_p1  ;;  %s58_s17 = ssub.s32 %s420_s10, %s563_s14 }
   0xa   : > { %p281_p6 = scmp.ge.s32.totalorder %s424_s11, 1  ;;  %p61_p7 = scmp.eq.s32.totalorder %s58_s17, 0 }
   0xb   : > { %p486_p8 = por %p80_p5, %p79_p3  ;;  %p119_p9 = scmp.lt.s32.totalorder %s424_s11, 3 }
   0xc   : > { %s492_s19 = scalar_select %p61_p7, %s412_s8, %s63_s15  }
   0xd   : > { %p120_p10 = pnand %p281_p6, %p119_p9 }
   0xe   : > { %s144_s20 = sand.u32 (!%p120_p10), 1, %s408_s7   ;;  %p152_p11 = scmp.lt.s32.totalorder (!%p120_p10), %s416_s9, 1 }
   0xf   : > { %123 = sbr.rel (%p120_p10) target bundleno = 44 (0x2c), region = 24  ;;  %s282_s21 = sshll.u32 (!%p120_p10), %s144_s20, 6 }
  0x10   : > { %s289_s23 = sshll.u32 (!%p120_p10), %s416_s9, 10  ;;  %s146_s25 = scalar_lea.vmem (!%p120_p10), [#allocation2], %s282_s21 }
  0x11   : > { %s198_s26 = sshll.u32 (!%p120_p10), %s146_s25, 4  ;;  %s506_s3 = scalar_lea.hbm (!%p120_p10), %s554_s1, %s289_s23  ;;  %s501_s26 = int_to_ptr.vmem [resolvable:$true] %s198_s26 }
  0x12   : > { %s508_s4 = scalar_lea.sflag (!%p120_p10), [#allocation3], %s144_s20  ;;  %s348_s5 = scalar_lea.vmem (!%p120_p10), %s501_s26, 1024 }
  0x13   : > { %p349_p12 = scmp.ne.s32.totalorder (!%p120_p10), %s501_s26, %s348_s5 }
  0x14   : > { %s153_s22 = scalar_select %p152_p11, %s416_s9, 1 }
  0x15   : > { %p350_p13 = pnand %p349_p12, %p479_p4  ;;  %s426_s9 = smov [#allocation2]  }
  0x16   : > { %s290_s24 = smul.u32 72, %s153_s22  ;;  %s352_s12 = sshll.u32 %s426_s9, 4  ;;  %s353_s12 = int_to_ptr.vmem [resolvable:$false] %s352_s12 }
  0x17   : > { %p351_p0 = pneg %p350_p13  ;;  %s354_s13 = scalar_lea.vmem %s353_s12, 2048 }
  0x18   : > { %s159_s29 = scalar_lea.vmem %s553_s0, %s290_s24  ;;  %p355_p1 = scmp.lt.s32.totalorder %s501_s26, %s353_s12 }
  0x19   : > { %v166_v0 = vld [vmem:[%s159_s29] sm:$0xff]  ;;  %v167_v1 = vld [vmem:[%s159_s29 + $0x8] sm:$0xff]  ;;  %v168_v2 = vld [vmem:[%s159_s29 + $0x10] sm:$0xff]  ;;  %p356_p2 = scmp.lt.s32.totalorder %s354_s13, %s348_s5 }
  0x1a   : > { %174 = vst [vmem:[%s146_s25] sm:$0xff] %v166_v0  ;;  %175 = vst [vmem:[%s146_s25 + $0x8] sm:$0xff] %v167_v1  ;;  %v169_v3 = vld [vmem:[%s159_s29 + $0x18] sm:$0xff]  ;;  %v170_v4 = vld [vmem:[%s159_s29 + $0x20] sm:$0xff] }
  0x1b   : > { %176 = vst [vmem:[%s146_s25 + $0x10] sm:$0xff] %v168_v2  ;;  %v171_v5 = vld [vmem:[%s159_s29 + $0x28] sm:$0xff]  ;;  %177 = vst [vmem:[%s146_s25 + $0x18] sm:$0xff] %v169_v3  ;;  %v172_v6 = vld [vmem:[%s159_s29 + $0x30] sm:$0xff]  ;;  %p357_p3 = por %p356_p2, %p355_p1 }
  0x1c   : > { %178 = vst [vmem:[%s146_s25 + $0x20] sm:$0xff] %v170_v4  ;;  %179 = vst [vmem:[%s146_s25 + $0x28] sm:$0xff] %v171_v5  ;;  %v173_v7 = vld [vmem:[%s159_s29 + $0x38] sm:$0xff] }
  0x1d   : > { %180 = vst [vmem:[%s146_s25 + $0x30] sm:$0xff] %v172_v6  ;;  %181 = vst [vmem:[%s146_s25 + $0x38] sm:$0xff] %v173_v7  ;;  %p358_p5 = pnand %p357_p3, %p351_p0 }
  0x1f   : > { %361 = shalt.err (!%p358_p5)
}
  0x20   : > { %s362_s15 = scalar_lea.hbm %s506_s3, 1024  ;;  %s366_s21 = scalar_lea.hbm %s554_s1, 2048 }
  0x21   : > { %p363_p6 = scmp.ne.s32.totalorder %s506_s3, %s362_s15  ;;  %p367_p10 = scmp.lt.s32.totalorder %s506_s3, %s554_s1 }
  0x22   : > { %p368_p11 = scmp.lt.s32.totalorder %s366_s21, %s362_s15 }
  0x23   : > { %p364_p7 = pnand %p363_p6, %p479_p4 }
  0x24   : > { %p369_p12 = por %p368_p11, %p367_p10 }
  0x25   : > { %p365_p9 = pneg %p364_p7 }
  0x27   : > { %p370_p13 = pnand %p369_p12, %p365_p9 }
  0x29   : > { %373 = shalt.err (!%p370_p13)
}
  0x2a   : > { %s427_s24 = smov 128   ;;  %s428_s25 = smov 8  }
  0x2b   : > { %291 = dma.vmem_to_hbm [thread:$0]  (%p479_p4), %s501_s26, 1024, %s506_s3, %s508_s4, %s427_s24, %s427_s24, %s428_s25  }
  0x2c PF: > { %p297_p0 = scmp.ge.s32.totalorder %s424_s11, 2  ;;  %s213_s27 = sand.u32 1, %s404_s6  }
  0x2d   : > { %s214_s28 = scalar_lea.sflag [#allocation3], %s213_s27 }
  0x2e   : > { %p294_p1 = pnand %p297_p0, %p486_p8 }
  0x30   : > { %p295_p2 = pneg %p294_p1 }
  0x32   : > { %399 = dma.done.wait (%p295_p2), %s214_s28, 1024  }
  0x33   : > { %401 = vsyncadd (%p295_p2), %s214_s28, 4294966272  ;;  %s14_s11 = sadd.s32 1, %s424_s11   ;;  %s557_s6 = smov %s408_s7 }
  0x34   : > { %p11_p3 = scmp.ge.s32.totalorder %s14_s11, 4   ;;  %s558_s7 = smov %s412_s8 }
  0x35   : > { %s559_s8 = smov %s492_s19  ;;  %s560_s9 = smov %s420_s10 }
  0x36   : > { %s561_s10 = smov %s563_s14  ;;  %13 = sbr.rel (!%p11_p3) target bundleno = 4 (0x4), region = 59 }
  0x3b   :  { %219 = vsyncpa [#allocation3], 1 }
  0x3c   :  { %221 = vsyncpa [#allocation3 + $0x1], 1 }

</bundles_post_ra>
